<compile_context>
chip_gen: v5e
topology: v5e:2x2
jax: 0.10.0
libtpu: 0.0.40
codegen_flags: <defaults>
</compile_context>

<pallas_src>
import numpy as np

import jax
import jax.numpy as jnp
from jax.experimental import pallas as pl
from jax.experimental.pallas import tpu as pltpu


# ---------------------------------------------------------------------------
# Init-time lowering: conv layers -> dense (K, N) operators (PyTorch semantics)
# ---------------------------------------------------------------------------
def _conv2d_as_matrix(w, H, W, stride, padding, dilation):
    """nn.Conv2d (weight (Cout,Cin,k,k)) as y_flat = x_flat @ M.  NCHW flatten."""
    c_out, c_in, k, _ = w.shape
    oh = (H + 2 * padding - dilation * (k - 1) - 1) // stride + 1
    ow = (W + 2 * padding - dilation * (k - 1) - 1) // stride + 1
    m = np.zeros((c_in * H * W, c_out * oh * ow), np.float32)
    for co in range(c_out):
        for ci in range(c_in):
            for i in range(k):
                for j in range(k):
                    wv = float(w[co, ci, i, j])
                    for y in range(oh):
                        hh = stride * y + dilation * i - padding
                        if hh < 0 or hh >= H:
                            continue
                        for x in range(ow):
                            ww = stride * x + dilation * j - padding
                            if ww < 0 or ww >= W:
                                continue
                            m[ci * H * W + hh * W + ww,
                              co * oh * ow + y * ow + x] += wv
    return m, oh, ow


def _conv_transpose2d_as_matrix(w, H, W, stride, padding, output_padding, dilation):
    """nn.ConvTranspose2d (weight (Cin,Cout,k,k)) as y_flat = x_flat @ M."""
    c_in, c_out, k, _ = w.shape
    oh = (H - 1) * stride - 2 * padding + dilation * (k - 1) + output_padding + 1
    ow = (W - 1) * stride - 2 * padding + dilation * (k - 1) + output_padding + 1
    m = np.zeros((c_in * H * W, c_out * oh * ow), np.float32)
    for ci in range(c_in):
        for co in range(c_out):
            for i in range(k):
                for j in range(k):
                    wv = float(w[ci, co, i, j])
                    for hh in range(H):
                        y = stride * hh + dilation * i - padding
                        if y < 0 or y >= oh:
                            continue
                        for ww in range(W):
                            x = stride * ww + dilation * j - padding
                            if x < 0 or x >= ow:
                                continue
                            m[ci * H * W + hh * W + ww,
                              co * oh * ow + y * ow + x] += wv
    return m, oh, ow


# ---------------------------------------------------------------------------
# The fused Pallas kernel: whole autoencoder forward, whole batch in one step
# ---------------------------------------------------------------------------
def _make_fused_kernel(n_layers):
    def kernel(*refs):
        x_ref = refs[0]
        out_ref = refs[-1]
        act = x_ref[...]                                 # (B, K0) f32, VMEM-resident
        for l in range(n_layers):
            w_ref = refs[1 + 2 * l]                      # (K_l, N_l) bf16 dense operator
            b_ref = refs[2 + 2 * l]                      # (1, N_l)  f32 flattened bias
            # bf16 x bf16 matmul on the MXU, f32 accumulation.
            act = jnp.dot(act.astype(jnp.bfloat16), w_ref[...],
                          preferred_element_type=jnp.float32)
            act = jnp.maximum(act + b_ref[...], 0.0)     # bias + ReLU, fused
        out_ref[...] = act                               # lane-dense store (N = 256)
    return kernel


def fused_autoencoder_forward(x_flat, layer_ops):
    """x_flat: (B, K0) f32.  layer_ops: [(M_l (K_l,N_l) bf16, b_l (1,N_l) f32), ...]."""
    B, K0 = x_flat.shape
    n_layers = len(layer_ops)
    n_out = layer_ops[-1][0].shape[1]

    # Single grid step: batch goes into the MXU M dimension; all layer
    # operators are loaded into VMEM exactly once (no double-buffering churn,
    # no per-image grid-step overhead, no duplicated weight DMA across TCs).
    in_specs = [pl.BlockSpec((B, K0), lambda i: (0, 0))]
    args = [x_flat]
    flops = 0
    bytes_accessed = x_flat.size * x_flat.dtype.itemsize + B * n_out * 4
    for mat, bias in layer_ops:
        in_specs.append(pl.BlockSpec(mat.shape, lambda i: (0, 0)))
        in_specs.append(pl.BlockSpec(bias.shape, lambda i: (0, 0)))
        args.append(mat)
        args.append(bias)
        flops += 2 * B * mat.shape[0] * mat.shape[1]
        bytes_accessed += (mat.size * mat.dtype.itemsize
                           + bias.size * bias.dtype.itemsize)

    return pl.pallas_call(
        _make_fused_kernel(n_layers),
        out_shape=jax.ShapeDtypeStruct((B, n_out), jnp.float32),
        grid=(1,),
        in_specs=in_specs,
        out_specs=pl.BlockSpec((B, n_out), lambda i: (0, 0)),
        compiler_params=pltpu.CompilerParams(
            dimension_semantics=("arbitrary",)),
        cost_estimate=pl.CostEstimate(
            flops=flops, transcendentals=0, bytes_accessed=bytes_accessed),
    )(*args)


# ---------------------------------------------------------------------------
# ConvAutoencoder: parameters + hoisted layer-operator prep + jitted forward
# ---------------------------------------------------------------------------
class ConvAutoencoder:
    def __init__(self, key):
        self.kernel_size = 3
        self.stride = 2
        self.padding = 1
        self.output_padding = 1
        self.dilation = 1
        self.channel_dim = 1
        self.layer_step = 4
        self.num_layers = 2
        self.horizontal_dim = 16
        self.vertical_dim = 16

        k = self.kernel_size
        # encoder: Conv2d(1->4), Conv2d(4->8)
        enc_shapes = [(4, 1), (8, 4)]            # (c_out, c_in)
        # decoder (generate_autoencoder insert(0,...) order): ConvT(8->4), ConvT(4->1)
        dec_shapes = [(8, 4), (4, 1)]            # (c_in, c_out)

        keys = jax.random.split(key, 2 * (len(enc_shapes) + len(dec_shapes)))
        ki = iter(range(len(keys)))
        self.enc_params = []
        for c_out, c_in in enc_shapes:
            w = 0.1 * jax.random.normal(keys[next(ki)], (c_out, c_in, k, k), jnp.float32)
            b = 0.1 * jax.random.normal(keys[next(ki)], (c_out,), jnp.float32)
            self.enc_params.append((np.asarray(w), np.asarray(b)))
        self.dec_params = []
        for c_in, c_out in dec_shapes:
            w = 0.1 * jax.random.normal(keys[next(ki)], (c_in, c_out, k, k), jnp.float32)
            b = 0.1 * jax.random.normal(keys[next(ki)], (c_out,), jnp.float32)
            self.dec_params.append((np.asarray(w), np.asarray(b)))

        # ---- hoisted weight prep: lower every layer once, at init ----
        # Dense operators are stored in bf16 (halves weight DMA, native MXU
        # bf16 path); biases stay f32 and are added to the f32 accumulator.
        self.layer_ops = []
        h, w_sp = self.horizontal_dim, self.vertical_dim
        for wgt, bias in self.enc_params:
            mat, oh, ow = _conv2d_as_matrix(wgt, h, w_sp, self.stride,
                                            self.padding, self.dilation)
            bvec = np.repeat(bias.astype(np.float32), oh * ow)[None, :]
            self.layer_ops.append((jnp.asarray(mat, dtype=jnp.bfloat16),
                                   jnp.asarray(bvec, dtype=jnp.float32)))
            h, w_sp = oh, ow
        for wgt, bias in self.dec_params:
            mat, oh, ow = _conv_transpose2d_as_matrix(wgt, h, w_sp, self.stride,
                                                      self.padding,
                                                      self.output_padding,
                                                      self.dilation)
            bvec = np.repeat(bias.astype(np.float32), oh * ow)[None, :]
            self.layer_ops.append((jnp.asarray(mat, dtype=jnp.bfloat16),
                                   jnp.asarray(bvec, dtype=jnp.float32)))
            h, w_sp = oh, ow
        self.final_shape = (self.dec_params[-1][0].shape[1], h, w_sp)  # (C_out, OH, OW)

        self._forward_jit = jax.jit(self._forward_impl)

    def _forward_impl(self, image, layer_ops):
        B = image.shape[0]
        x_flat = image.astype(jnp.float32).reshape(B, -1)   # NCHW flatten -> (B, C*H*W)
        y = fused_autoencoder_forward(x_flat, layer_ops)
        c_out, oh, ow = self.final_shape
        return y.reshape(B, c_out, oh, ow)

    def forward(self, inputs):
        image = inputs['image']
        depth = inputs['depth']
        output = self._forward_jit(image, self.layer_ops)
        return {'input': image, 'depth': depth, 'output': output}

    # TODO(synk): loss_function (SSIM / L1 / RMSE metrics) is training-time code,
    # not part of the forward pass, and is not implemented here.


# ---------------------------------------------------------------------------
# Independent numpy reference (direct PyTorch semantics) for a correctness check
# ---------------------------------------------------------------------------
def _ref_conv2d(x, w, b, stride, padding, dilation):
    n, c_in, H, W = x.shape
    c_out, _, k, _ = w.shape
    oh = (H + 2 * padding - dilation * (k - 1) - 1) // stride + 1
    ow = (W + 2 * padding - dilation * (k - 1) - 1) // stride + 1
    xp = np.zeros((n, c_in, H + 2 * padding, W + 2 * padding), x.dtype)
    xp[:, :, padding:padding + H, padding:padding + W] = x
    y = np.zeros((n, c_out, oh, ow), x.dtype)
    for yy in range(oh):
        for xx in range(ow):
            patch = xp[:, :,
                       stride * yy:stride * yy + dilation * (k - 1) + 1:dilation,
                       stride * xx:stride * xx + dilation * (k - 1) + 1:dilation]
            y[:, :, yy, xx] = np.einsum('ncij,ocij->no', patch, w)
    return y + b[None, :, None, None]


def _ref_conv_transpose2d(x, w, b, stride, padding, output_padding, dilation):
    # zero-stuff + flipped-kernel stride-1 conv (standard ConvTranspose2d equivalence)
    n, c_in, H, W = x.shape
    _, c_out, k, _ = w.shape
    xs = np.zeros((n, c_in, (H - 1) * stride + 1, (W - 1) * stride + 1), x.dtype)
    xs[:, :, ::stride, ::stride] = x
    lo = dilation * (k - 1) - padding
    hi = dilation * (k - 1) - padding + output_padding
    assert lo >= 0 and hi >= 0
    xp = np.pad(xs, ((0, 0), (0, 0), (lo, hi), (lo, hi)))
    w_eq = np.ascontiguousarray(w[:, :, ::-1, ::-1].transpose(1, 0, 2, 3))
    return _ref_conv2d(xp, w_eq, b, 1, 0, dilation)


def _ref_forward(image, enc_params, dec_params, stride, padding, output_padding, dilation):
    a = image.astype(np.float64)
    for wgt, bias in enc_params:
        a = np.maximum(_ref_conv2d(a, wgt.astype(np.float64), bias.astype(np.float64),
                                   stride, padding, dilation), 0.0)
    for wgt, bias in dec_params:
        a = np.maximum(_ref_conv_transpose2d(a, wgt.astype(np.float64),
                                             bias.astype(np.float64),
                                             stride, padding, output_padding, dilation), 0.0)
    return a


if __name__ == "__main__":
    key = jax.random.PRNGKey(0)
    k_img, k_dep, k_par = jax.random.split(key, 3)

    batch, C, H, W = 2, 1, 16, 16
    image = jax.random.normal(k_img, (batch, C, H, W), jnp.float32)
    depth = jax.random.normal(k_dep, (batch, C, H, W), jnp.float32)

    model = ConvAutoencoder(k_par)
    out = model.forward({'image': image, 'depth': depth})
    jax.block_until_ready(out)

    assert out['output'].shape == (batch, 1, H, W), out['output'].shape
    assert out['input'].shape == image.shape
    assert out['depth'].shape == depth.shape

    # Correctness cross-check against a direct (non-Pallas) numpy implementation.
    # Tolerance covers the bf16 weight/activation rounding (accumulation is f32).
    ref = _ref_forward(np.asarray(image), model.enc_params, model.dec_params,
                       model.stride, model.padding, model.output_padding, model.dilation)
    np.testing.assert_allclose(np.asarray(out['output']), ref, rtol=3e-2, atol=3e-2)

    print("KERNEL_OK")
</pallas_src>

<mosaic_0001>
module attributes {stable_mosaic.version = 11 : i64} {
  func.func @kernel(%arg0: i32, %arg1: memref<2x256xf32, #tpu.memory_space<vmem>>, %arg2: memref<256x256xbf16, #tpu.memory_space<vmem>>, %arg3: memref<1x256xf32, #tpu.memory_space<vmem>>, %arg4: memref<256x128xbf16, #tpu.memory_space<vmem>>, %arg5: memref<1x128xf32, #tpu.memory_space<vmem>>, %arg6: memref<128x256xbf16, #tpu.memory_space<vmem>>, %arg7: memref<1x256xf32, #tpu.memory_space<vmem>>, %arg8: memref<256x256xbf16, #tpu.memory_space<vmem>>, %arg9: memref<1x256xf32, #tpu.memory_space<vmem>>, %arg10: memref<2x256xf32, #tpu.memory_space<vmem>>) attributes {dimension_semantics = [#tpu.dimension_semantics<arbitrary>], iteration_bounds = array<i64: 1>, scalar_prefetch = 0 : i64, scratch_operands = 0 : i64, tpu.core_type = #tpu.core_type<tc>, window_params = [{pipeline_mode = #tpu.pipeline_mode<synchronous>, transform_indices = @transform_0, window_bounds = array<i64: 2, 256>}, {pipeline_mode = #tpu.pipeline_mode<synchronous>, transform_indices = @transform_1, window_bounds = array<i64: 256, 256>}, {pipeline_mode = #tpu.pipeline_mode<synchronous>, transform_indices = @transform_2, window_bounds = array<i64: 1, 256>}, {pipeline_mode = #tpu.pipeline_mode<synchronous>, transform_indices = @transform_3, window_bounds = array<i64: 256, 128>}, {pipeline_mode = #tpu.pipeline_mode<synchronous>, transform_indices = @transform_4, window_bounds = array<i64: 1, 128>}, {pipeline_mode = #tpu.pipeline_mode<synchronous>, transform_indices = @transform_5, window_bounds = array<i64: 128, 256>}, {pipeline_mode = #tpu.pipeline_mode<synchronous>, transform_indices = @transform_6, window_bounds = array<i64: 1, 256>}, {pipeline_mode = #tpu.pipeline_mode<synchronous>, transform_indices = @transform_7, window_bounds = array<i64: 256, 256>}, {pipeline_mode = #tpu.pipeline_mode<synchronous>, transform_indices = @transform_8, window_bounds = array<i64: 1, 256>}, {pipeline_mode = #tpu.pipeline_mode<synchronous>, transform_indices = @transform_9, window_bounds = array<i64: 2, 256>}]} {
    %c0 = arith.constant 0 : index
    %c0_0 = arith.constant 0 : index
    %0 = vector.load %arg1[%c0, %c0_0] : memref<2x256xf32, #tpu.memory_space<vmem>>, vector<2x256xf32>
    %1 = arith.truncf %0 : vector<2x256xf32> to vector<2x256xbf16>
    %c0_1 = arith.constant 0 : index
    %c0_2 = arith.constant 0 : index
    %2 = vector.load %arg2[%c0_1, %c0_2] : memref<256x256xbf16, #tpu.memory_space<vmem>>, vector<256x256xbf16>
    %cst = arith.constant dense<0.000000e+00> : vector<2x256xf32>
    %3 = tpu.matmul %1, %2, %cst {dimension_numbers = #tpu.dot_dimension_numbers<[1], [0], [0], [1], [0, 0, 1, 1], [], []>} : vector<2x256xbf16>, vector<256x256xbf16>, vector<2x256xf32> -> vector<2x256xf32>
    %c0_3 = arith.constant 0 : index
    %c0_4 = arith.constant 0 : index
    %4 = vector.load %arg3[%c0_3, %c0_4] : memref<1x256xf32, #tpu.memory_space<vmem>>, vector<1x256xf32>
    %5 = vector.broadcast %4 : vector<1x256xf32> to vector<2x256xf32>
    %6 = arith.addf %3, %5 : vector<2x256xf32>
    %cst_5 = arith.constant 0.000000e+00 : f32
    %7 = vector.broadcast %cst_5 : f32 to vector<2x256xf32>
    %8 = arith.maximumf %6, %7 : vector<2x256xf32>
    %9 = arith.truncf %8 : vector<2x256xf32> to vector<2x256xbf16>
    %c0_6 = arith.constant 0 : index
    %c0_7 = arith.constant 0 : index
    %10 = vector.load %arg4[%c0_6, %c0_7] : memref<256x128xbf16, #tpu.memory_space<vmem>>, vector<256x128xbf16>
    %cst_8 = arith.constant dense<0.000000e+00> : vector<2x128xf32>
    %11 = tpu.matmul %9, %10, %cst_8 {dimension_numbers = #tpu.dot_dimension_numbers<[1], [0], [0], [1], [0, 0, 1, 1], [], []>} : vector<2x256xbf16>, vector<256x128xbf16>, vector<2x128xf32> -> vector<2x128xf32>
    %c0_9 = arith.constant 0 : index
    %c0_10 = arith.constant 0 : index
    %12 = vector.load %arg5[%c0_9, %c0_10] : memref<1x128xf32, #tpu.memory_space<vmem>>, vector<1x128xf32>
    %13 = vector.broadcast %12 : vector<1x128xf32> to vector<2x128xf32>
    %14 = arith.addf %11, %13 : vector<2x128xf32>
    %cst_11 = arith.constant 0.000000e+00 : f32
    %15 = vector.broadcast %cst_11 : f32 to vector<2x128xf32>
    %16 = arith.maximumf %14, %15 : vector<2x128xf32>
    %17 = arith.truncf %16 : vector<2x128xf32> to vector<2x128xbf16>
    %c0_12 = arith.constant 0 : index
    %c0_13 = arith.constant 0 : index
    %18 = vector.load %arg6[%c0_12, %c0_13] : memref<128x256xbf16, #tpu.memory_space<vmem>>, vector<128x256xbf16>
    %cst_14 = arith.constant dense<0.000000e+00> : vector<2x256xf32>
    %19 = tpu.matmul %17, %18, %cst_14 {dimension_numbers = #tpu.dot_dimension_numbers<[1], [0], [0], [1], [0, 0, 1, 1], [], []>} : vector<2x128xbf16>, vector<128x256xbf16>, vector<2x256xf32> -> vector<2x256xf32>
    %c0_15 = arith.constant 0 : index
    %c0_16 = arith.constant 0 : index
    %20 = vector.load %arg7[%c0_15, %c0_16] : memref<1x256xf32, #tpu.memory_space<vmem>>, vector<1x256xf32>
    %21 = vector.broadcast %20 : vector<1x256xf32> to vector<2x256xf32>
    %22 = arith.addf %19, %21 : vector<2x256xf32>
    %cst_17 = arith.constant 0.000000e+00 : f32
    %23 = vector.broadcast %cst_17 : f32 to vector<2x256xf32>
    %24 = arith.maximumf %22, %23 : vector<2x256xf32>
    %25 = arith.truncf %24 : vector<2x256xf32> to vector<2x256xbf16>
    %c0_18 = arith.constant 0 : index
    %c0_19 = arith.constant 0 : index
    %26 = vector.load %arg8[%c0_18, %c0_19] : memref<256x256xbf16, #tpu.memory_space<vmem>>, vector<256x256xbf16>
    %cst_20 = arith.constant dense<0.000000e+00> : vector<2x256xf32>
    %27 = tpu.matmul %25, %26, %cst_20 {dimension_numbers = #tpu.dot_dimension_numbers<[1], [0], [0], [1], [0, 0, 1, 1], [], []>} : vector<2x256xbf16>, vector<256x256xbf16>, vector<2x256xf32> -> vector<2x256xf32>
    %c0_21 = arith.constant 0 : index
    %c0_22 = arith.constant 0 : index
    %28 = vector.load %arg9[%c0_21, %c0_22] : memref<1x256xf32, #tpu.memory_space<vmem>>, vector<1x256xf32>
    %29 = vector.broadcast %28 : vector<1x256xf32> to vector<2x256xf32>
    %30 = arith.addf %27, %29 : vector<2x256xf32>
    %cst_23 = arith.constant 0.000000e+00 : f32
    %31 = vector.broadcast %cst_23 : f32 to vector<2x256xf32>
    %32 = arith.maximumf %30, %31 : vector<2x256xf32>
    %c0_24 = arith.constant 0 : index
    %c0_25 = arith.constant 0 : index
    %33 = vector.load %arg10[%c0_24, %c0_25] : memref<2x256xf32, #tpu.memory_space<vmem>>, vector<2x256xf32>
    tpu.vector_store %arg10[%c0_24, %c0_25], %32 {strides = array<i32>} : memref<2x256xf32, #tpu.memory_space<vmem>>, vector<2x256xf32>,
    return
  }
  func.func @transform_0(%arg0: i32) -> (i32, i32) {
    %c0_i32 = arith.constant 0 : i32
    %c0_i32_0 = arith.constant 0 : i32
    %c0_i32_1 = arith.constant 0 : i32
    return %c0_i32, %c0_i32_0 : i32, i32
  }
  func.func @transform_1(%arg0: i32) -> (i32, i32) {
    %c0_i32 = arith.constant 0 : i32
    %c0_i32_0 = arith.constant 0 : i32
    %c0_i32_1 = arith.constant 0 : i32
    return %c0_i32, %c0_i32_0 : i32, i32
  }
  func.func @transform_2(%arg0: i32) -> (i32, i32) {
    %c0_i32 = arith.constant 0 : i32
    %c0_i32_0 = arith.constant 0 : i32
    %c0_i32_1 = arith.constant 0 : i32
    return %c0_i32, %c0_i32_0 : i32, i32
  }
  func.func @transform_3(%arg0: i32) -> (i32, i32) {
    %c0_i32 = arith.constant 0 : i32
    %c0_i32_0 = arith.constant 0 : i32
    %c0_i32_1 = arith.constant 0 : i32
    return %c0_i32, %c0_i32_0 : i32, i32
  }
  func.func @transform_4(%arg0: i32) -> (i32, i32) {
    %c0_i32 = arith.constant 0 : i32
    %c0_i32_0 = arith.constant 0 : i32
    %c0_i32_1 = arith.constant 0 : i32
    return %c0_i32, %c0_i32_0 : i32, i32
  }
  func.func @transform_5(%arg0: i32) -> (i32, i32) {
    %c0_i32 = arith.constant 0 : i32
    %c0_i32_0 = arith.constant 0 : i32
    %c0_i32_1 = arith.constant 0 : i32
    return %c0_i32, %c0_i32_0 : i32, i32
  }
  func.func @transform_6(%arg0: i32) -> (i32, i32) {
    %c0_i32 = arith.constant 0 : i32
    %c0_i32_0 = arith.constant 0 : i32
    %c0_i32_1 = arith.constant 0 : i32
    return %c0_i32, %c0_i32_0 : i32, i32
  }
  func.func @transform_7(%arg0: i32) -> (i32, i32) {
    %c0_i32 = arith.constant 0 : i32
    %c0_i32_0 = arith.constant 0 : i32
    %c0_i32_1 = arith.constant 0 : i32
    return %c0_i32, %c0_i32_0 : i32, i32
  }
  func.func @transform_8(%arg0: i32) -> (i32, i32) {
    %c0_i32 = arith.constant 0 : i32
    %c0_i32_0 = arith.constant 0 : i32
    %c0_i32_1 = arith.constant 0 : i32
    return %c0_i32, %c0_i32_0 : i32, i32
  }
  func.func @transform_9(%arg0: i32) -> (i32, i32) {
    %c0_i32 = arith.constant 0 : i32
    %c0_i32_0 = arith.constant 0 : i32
    %c0_i32_1 = arith.constant 0 : i32
    return %c0_i32, %c0_i32_0 : i32, i32
  }
}

</mosaic_0001>

<bundles_post_ra>
// kernel: _forward_impl.1
= control target key start
LH: loop header
LB: loop body
LE: loop exit
PB: predicated region body
PF: predicated region fallthrough
CT: control target
= control target key end

     0   :  { %14 = vsyncpa [#allocation3], 0  ;;  %s1595_s0 = inlined_call_operand.vmem [shape: f32[2,256], index: 0, kind: input, shape index: {}]   ;;  %s1596_s1 = inlined_call_operand.hbm [shape: bf16[256,256], index: 1, kind: input, shape index: {}]   ;;  %s1597_s2 = inlined_call_operand.vmem [shape: f32[1,256], index: 2, kind: input, shape index: {}]   ;;  %s1598_s3 = inlined_call_operand.hbm [shape: bf16[256,128], index: 3, kind: input, shape index: {}]   ;;  %s1599_s4 = inlined_call_operand.vmem [shape: f32[1,128], index: 4, kind: input, shape index: {}]   ;;  %s1600_s5 = inlined_call_operand.hbm [shape: bf16[128,256], index: 5, kind: input, shape index: {}]   ;;  %s1601_s6 = inlined_call_operand.vmem [shape: f32[1,256], index: 6, kind: input, shape index: {}]   ;;  %s1602_s7 = inlined_call_operand.hbm [shape: bf16[256,256], index: 7, kind: input, shape index: {}]   ;;  %s1603_s8 = inlined_call_operand.vmem [shape: f32[1,256], index: 8, kind: input, shape index: {}]   ;;  %s1604_s9 = inlined_call_operand.vmem [shape: f32[2,256], index: 9, kind: output, shape index: {}]  }
   0x1   :  { %15 = vsyncpa [#allocation5], 0  ;;  %s38_s11 = sshll.u32 %s1598_s3, 4  ;;  %s39_s11 = int_to_ptr.hbm [resolvable:$true] %s38_s11 }
   0x2   :  { %16 = vsyncpa [#allocation8], 0  ;;  %s1507_s12 = smov [#allocation4]   ;;  %s23_s16 = sshll.u32 %s1596_s1, 4  ;;  %s24_s16 = int_to_ptr.hbm [resolvable:$true] %s23_s16 }
   0x3   :  { %s40_s13 = sshll.u32 %s1507_s12, 4  ;;  %s1508_s17 = smov 64   ;;  %s41_s13 = int_to_ptr.vmem [resolvable:$true] %s40_s13 }
   0x4   :  { %s1509_s18 = smov 4   ;;  %s1510_s19 = smov [#allocation2]  }
   0x5   :  { %46 = dma.hbm_to_vmem [thread:$0]  %s39_s11, 2048, %s41_s13, [#allocation5], %s1508_s17, %s1508_s17, %s1509_s18  }
   0x6   :  { %s25_s20 = sshll.u32 %s1510_s19, 4  ;;  %s1511_s21 = smov 128   ;;  %s26_s20 = int_to_ptr.vmem [resolvable:$true] %s25_s20 }
   0x7   :  { %s1512_s22 = smov 8   ;;  %s53_s24 = sshll.u32 %s1600_s5, 4  ;;  %s54_s24 = int_to_ptr.hbm [resolvable:$true] %s53_s24 }
   0x8   :  { %31 = dma.hbm_to_vmem [thread:$0]  %s24_s16, 4096, %s26_s20, [#allocation3], %s1511_s21, %s1511_s21, %s1512_s22  }
   0x9   :  { %s1513_s25 = smov [#allocation6]   ;;  %s68_s28 = sshll.u32 %s1602_s7, 4  ;;  %s69_s28 = int_to_ptr.hbm [resolvable:$true] %s68_s28 }
   0xa   :  { %s55_s26 = sshll.u32 %s1513_s25, 4  ;;  %s1514_s29 = smov [#allocation7]   ;;  %s56_s26 = int_to_ptr.vmem [resolvable:$true] %s55_s26 }
   0xb   :  { %61 = dma.hbm_to_vmem [thread:$0]  %s54_s24, 2048, %s56_s26, [#allocation5], %s1511_s21, %s1511_s21, %s1512_s22  }
   0xc   :  { %s70_s30 = sshll.u32 %s1514_s29, 4  ;;  %s71_s30 = int_to_ptr.vmem [resolvable:$true] %s70_s30 }
   0xd   :  { %76 = dma.hbm_to_vmem [thread:$0]  %s69_s28, 4096, %s71_s30, [#allocation8], %s1511_s21, %s1511_s21, %s1512_s22  }
   0xe   :  { %1501 = dma.done.wait [#allocation3], 4096  }
   0xf   :  { %1502 = vsyncadd [#allocation3], 4294963200 }
  0x10   :  { %1503 = dma.done.wait [#allocation5], 4096  }
  0x11   :  { %1504 = vsyncadd [#allocation5], 4294963200 }
  0x12   :  { %1505 = dma.done.wait [#allocation8], 4096  }
  0x13   :  { %1506 = vsyncadd [#allocation8], 4294963200  ;;  %v974_v0 = vld [vmem:[#allocation2 + $0x70] sm:$0xf]  ;;  %v1315_v1 = vld [vmem:[#allocation2 + $0x74] sm:$0xf0] }
  0x14   :  { %v1038_v2 = vld [vmem:[#allocation2 + $0xf0] sm:$0xf]  ;;  %v975_v3 = vor.u32 %v1315_v1, %v974_v0  ;;  %v1331_v4 = vld [vmem:[#allocation2 + $0xf4] sm:$0xf0]  ;;  %v1314_v5 = vld [vmem:[#allocation2 + $0x74] sm:$0xf] }
  0x15   :  { %v976_v6 = vld [vmem:[#allocation2 + $0x78] sm:$0xf0]  ;;  %v1039_v7 = vor.u32 %v1331_v4, %v1038_v2  ;;  %v1330_v9 = vld [vmem:[#allocation2 + $0xf4] sm:$0xf]  ;;  %v966_v11 = vld [vmem:[#allocation2 + $0x60] sm:$0xf] }
  0x16   :  { %v979_v8 = vor.u32 %v1314_v5, %v976_v6  ;;  %v1040_v10 = vld [vmem:[#allocation2 + $0xf8] sm:$0xf0]  ;;  %302 = vmatpush.bf16.msra.mxu0 %v975_v3  ;;  %v1313_v13 = vld [vmem:[#allocation2 + $0x64] sm:$0xf0]  ;;  %v1030_v14 = vld [vmem:[#allocation2 + $0xe0] sm:$0xf] }
  0x17   :  { %v1043_v12 = vor.u32 %v1330_v9, %v1040_v10  ;;  %v1329_v15 = vld [vmem:[#allocation2 + $0xe4] sm:$0xf0]  ;;  %315 = vmatpush.bf16.msra.mxu1 %v1039_v7  ;;  %v967_v16 = vor.u32 %v1313_v13, %v966_v11  ;;  %v1312_v18 = vld [vmem:[#allocation2 + $0x64] sm:$0xf]  ;;  %v968_v19 = vld [vmem:[#allocation2 + $0x68] sm:$0xf0] }
  0x18   :  { %328 = vmatpush.bf16.msra.mxu2 %v979_v8  ;;  %v1031_v17 = vor.u32 %v1329_v15, %v1030_v14  ;;  %v1328_v20 = vld [vmem:[#allocation2 + $0xe4] sm:$0xf]  ;;  %v971_v21 = vor.u32 %v1312_v18, %v968_v19  ;;  %v1032_v22 = vld [vmem:[#allocation2 + $0xe8] sm:$0xf0]  ;;  %v958_v23 = vld [vmem:[#allocation2 + $0x50] sm:$0xf] }
  0x19   :  { %341 = vmatpush.bf16.msra.mxu3 %v1043_v12  ;;  %v1311_v24 = vld [vmem:[#allocation2 + $0x54] sm:$0xf0]  ;;  %v1035_v25 = vor.u32 %v1328_v20, %v1032_v22  ;;  %v1022_v26 = vld [vmem:[#allocation2 + $0xd0] sm:$0xf]  ;;  %v1310_v28 = vld [vmem:[#allocation2 + $0x54] sm:$0xf] }
  0x1a   :  { %v1327_v27 = vld [vmem:[#allocation2 + $0xd4] sm:$0xf0]  ;;  %303 = vmatpush.bf16.msra.mxu0 %v967_v16  ;;  %v959_v29 = vor.u32 %v1311_v24, %v958_v23  ;;  %v960_v30 = vld [vmem:[#allocation2 + $0x58] sm:$0xf0]  ;;  %v1326_v31 = vld [vmem:[#allocation2 + $0xd4] sm:$0xf] }
  0x1b   :  { %v1024_v32 = vld [vmem:[#allocation2 + $0xd8] sm:$0xf0]  ;;  %316 = vmatpush.bf16.msra.mxu1 %v1031_v17  ;;  %v1023_v33 = vor.u32 %v1327_v27, %v1022_v26  ;;  %v963_v34 = vor.u32 %v1310_v28, %v960_v30  ;;  %v950_v35 = vld [vmem:[#allocation2 + $0x40] sm:$0xf]  ;;  %v1309_v36 = vld [vmem:[#allocation2 + $0x44] sm:$0xf0] }
  0x1c   :  { %329 = vmatpush.bf16.msra.mxu2 %v971_v21  ;;  %v1014_v37 = vld [vmem:[#allocation2 + $0xc0] sm:$0xf]  ;;  %v1027_v38 = vor.u32 %v1326_v31, %v1024_v32  ;;  %v1325_v39 = vld [vmem:[#allocation2 + $0xc4] sm:$0xf0]  ;;  %v1308_v40 = vld [vmem:[#allocation2 + $0x44] sm:$0xf]  ;;  %v951_v44 = vor.u32 %v1309_v36, %v950_v35 }
  0x1d   :  { %342 = vmatpush.bf16.msra.mxu3 %v1035_v25  ;;  %v952_v41 = vld [vmem:[#allocation2 + $0x48] sm:$0xf0]  ;;  %v1324_v42 = vld [vmem:[#allocation2 + $0xc4] sm:$0xf]  ;;  %v1015_v45 = vor.u32 %v1325_v39, %v1014_v37  ;;  %v942_v47 = vld [vmem:[#allocation2 + $0x30] sm:$0xf] }
  0x1e   :  { %v1016_v43 = vld [vmem:[#allocation2 + $0xc8] sm:$0xf0]  ;;  %304 = vmatpush.bf16.msra.mxu0 %v959_v29  ;;  %v955_v46 = vor.u32 %v1308_v40, %v952_v41  ;;  %v1307_v48 = vld [vmem:[#allocation2 + $0x34] sm:$0xf0]  ;;  %v1006_v49 = vld [vmem:[#allocation2 + $0xb0] sm:$0xf] }
  0x1f   :  { %317 = vmatpush.bf16.msra.mxu1 %v1023_v33  ;;  %v1019_v50 = vor.u32 %v1324_v42, %v1016_v43  ;;  %v1323_v51 = vld [vmem:[#allocation2 + $0xb4] sm:$0xf0]  ;;  %v1306_v52 = vld [vmem:[#allocation2 + $0x34] sm:$0xf]  ;;  %v944_v53 = vld [vmem:[#allocation2 + $0x38] sm:$0xf0]  ;;  %v943_v56 = vor.u32 %v1307_v48, %v942_v47 }
  0x20   :  { %330 = vmatpush.bf16.msra.mxu2 %v963_v34  ;;  %v1322_v54 = vld [vmem:[#allocation2 + $0xb4] sm:$0xf]  ;;  %v1008_v55 = vld [vmem:[#allocation2 + $0xb8] sm:$0xf0]  ;;  %v1007_v57 = vor.u32 %v1323_v51, %v1006_v49  ;;  %v947_v58 = vor.u32 %v1306_v52, %v944_v53  ;;  %v934_v59 = vld [vmem:[#allocation2 + $0x20] sm:$0xf] }
  0x21   :  { %343 = vmatpush.bf16.msra.mxu3 %v1027_v38  ;;  %v1305_v60 = vld [vmem:[#allocation2 + $0x24] sm:$0xf0]  ;;  %v998_v61 = vld [vmem:[#allocation2 + $0xa0] sm:$0xf]  ;;  %v1011_v62 = vor.u32 %v1322_v54, %v1008_v55  ;;  %v1304_v0 = vld [vmem:[#allocation2 + $0x24] sm:$0xf] }
  0x22   :  { %305 = vmatpush.bf16.msra.mxu0 %v951_v44  ;;  %v1321_v63 = vld [vmem:[#allocation2 + $0xa4] sm:$0xf0]  ;;  %v936_v1 = vld [vmem:[#allocation2 + $0x28] sm:$0xf0]  ;;  %v1320_v2 = vld [vmem:[#allocation2 + $0xa4] sm:$0xf]  ;;  %v935_v4 = vor.u32 %v1305_v60, %v934_v59 }
  0x23   :  { %318 = vmatpush.bf16.msra.mxu1 %v1015_v45  ;;  %v1000_v3 = vld [vmem:[#allocation2 + $0xa8] sm:$0xf0]  ;;  %v926_v5 = vld [vmem:[#allocation2 + $0x10] sm:$0xf]  ;;  %v999_v6 = vor.u32 %v1321_v63, %v998_v61  ;;  %v939_v7 = vor.u32 %v1304_v0, %v936_v1  ;;  %v1303_v8 = vld [vmem:[#allocation2 + $0x14] sm:$0xf0] }
  0x24   :  { %331 = vmatpush.bf16.msra.mxu2 %v955_v46  ;;  %v990_v9 = vld [vmem:[#allocation2 + $0x90] sm:$0xf]  ;;  %v1319_v10 = vld [vmem:[#allocation2 + $0x94] sm:$0xf0]  ;;  %v1003_v11 = vor.u32 %v1320_v2, %v1000_v3  ;;  %v1302_v12 = vld [vmem:[#allocation2 + $0x14] sm:$0xf]  ;;  %v927_v17 = vor.u32 %v1303_v8, %v926_v5 }
  0x25   :  { %344 = vmatpush.bf16.msra.mxu3 %v1019_v50  ;;  %v928_v13 = vld [vmem:[#allocation2 + $0x18] sm:$0xf0]  ;;  %v95_v14 = vld [vmem:[%s1595_s0] sm:$0xf]  ;;  %v1318_v15 = vld [vmem:[#allocation2 + $0x94] sm:$0xf]  ;;  %v991_v19 = vor.u32 %v1319_v10, %v990_v9 }
  0x26   :  { %306 = vmatpush.bf16.msra.mxu0 %v943_v56  ;;  %v992_v16 = vld [vmem:[#allocation2 + $0x98] sm:$0xf0]  ;;  %97 = vst [vmem:[#allocation1] ss:$4 sm:$0xff] %v95_v14  ;;  %v918_v18 = vld [vmem:[#allocation2] sm:$0xf]  ;;  %v931_v20 = vor.u32 %v1302_v12, %v928_v13 }
  0x27   :  { %319 = vmatpush.bf16.msra.mxu1 %v1007_v57  ;;  %v1301_v21 = vld [vmem:[#allocation2 + $0x4] sm:$0xf0]  ;;  %v982_v22 = vld [vmem:[#allocation2 + $0x80] sm:$0xf]  ;;  %v995_v24 = vor.u32 %v1318_v15, %v992_v16  ;;  %v1300_v25 = vld [vmem:[#allocation2 + $0x4] sm:$0xf] }
  0x28   :  { %332 = vmatpush.bf16.msra.mxu2 %v947_v58  ;;  %v1317_v23 = vld [vmem:[#allocation2 + $0x84] sm:$0xf0]  ;;  %v920_v26 = vld [vmem:[#allocation2 + $0x8] sm:$0xf0]  ;;  %v1316_v27 = vld [vmem:[#allocation2 + $0x84] sm:$0xf]  ;;  %v919_v29 = vor.u32 %v1301_v21, %v918_v18 }
  0x29   :  { %345 = vmatpush.bf16.msra.mxu3 %v1011_v62  ;;  %v984_v28 = vld [vmem:[#allocation2 + $0x88] sm:$0xf0]  ;;  %v983_v30 = vor.u32 %v1317_v23, %v982_v22  ;;  %v923_v31 = vor.u32 %v1300_v25, %v920_v26  ;;  %v1339_v32 = vld [vmem:[#allocation4 + $0x38] sm:$0xff]  ;;  %v1338_v39 = vld [vmem:[#allocation4 + $0x30] sm:$0xff]  ;;  %vm905_vm0 = vcmask 1041408  }
  0x2a   :  { %307 = vmatpush.bf16.msra.mxu0 %v935_v4  ;;  %v987_v33 = vor.u32 %v1316_v27, %v984_v28  ;;  %v1347_v37 = vld [vmem:[#allocation4 + $0x78] sm:$0xff]  ;;  %v1346_v40 = vld [vmem:[#allocation4 + $0x70] sm:$0xff]  ;;  %v1337_v41 = vld [vmem:[#allocation4 + $0x28] sm:$0xff] }
  0x2b   :  { %320 = vmatpush.bf16.msra.mxu1 %v999_v6  ;;  %v1345_v42 = vld [vmem:[#allocation4 + $0x68] sm:$0xff]  ;;  %v1336_v43 = vld [vmem:[#allocation4 + $0x20] sm:$0xff]  ;;  %v1335_v45 = vld [vmem:[#allocation4 + $0x18] sm:$0xff] }
  0x2c   :  { %333 = vmatpush.bf16.msra.mxu2 %v939_v7  ;;  %v1344_v44 = vld [vmem:[#allocation4 + $0x60] sm:$0xff]  ;;  %v1334_v46 = vld [vmem:[#allocation4 + $0x10] sm:$0xff]  ;;  %v1343_v47 = vld [vmem:[#allocation4 + $0x58] sm:$0xff] }
  0x2d   :  { %346 = vmatpush.bf16.msra.mxu3 %v1003_v11  ;;  %v98_v34 = vld.sshfl [vmem:[#allocation1] sm:$0xff pattern:$0x73625140]  ;;  %v99_v35 = vld.sshfl [vmem:[#allocation1 + $0x8] sm:$0xff pattern:$0x73625140] }
  0x2e   :  { %308 = vmatpush.bf16.msra.mxu0 %v927_v17  ;;  %v102_v36 = vpack.c.bf16 %v98_v34, %v98_v34  ;;  %v103_v38 = vpack.c.bf16 %v99_v35, %v99_v35  ;;  %v1333_v48 = vld [vmem:[#allocation4 + $0x8] sm:$0xff]  ;;  %v1342_v49 = vld [vmem:[#allocation4 + $0x50] sm:$0xff]  ;;  %v1332_v50 = vld [vmem:[#allocation4] sm:$0xff] }
  0x2f   :  { %321 = vmatpush.bf16.msra.mxu1 %v991_v19  ;;  %v1341_v51 = vld [vmem:[#allocation4 + $0x48] sm:$0xff]  ;;  %v1340_v52 = vld [vmem:[#allocation4 + $0x40] sm:$0xff]  ;;  %v1166_v53 = vld [vmem:[#allocation6 + $0x70] sm:$0xf] }
  0x30   :  { %334 = vmatpush.bf16.msra.mxu2 %v931_v20  ;;  %v1363_v54 = vld [vmem:[#allocation6 + $0x74] sm:$0xf0]  ;;  %v1362_v55 = vld [vmem:[#allocation6 + $0x74] sm:$0xf]  ;;  %v1168_v57 = vld [vmem:[#allocation6 + $0x78] sm:$0xf0] }
  0x31   :  { %347 = vmatpush.bf16.msra.mxu3 %v995_v24  ;;  %v1167_v56 = vor.u32 %v1363_v54, %v1166_v53  ;;  %v1158_v58 = vld [vmem:[#allocation6 + $0x60] sm:$0xf]  ;;  %v1361_v59 = vld [vmem:[#allocation6 + $0x64] sm:$0xf0]  ;;  %v1171_v60 = vor.u32 %v1362_v55, %v1168_v57  ;;  %v1360_v61 = vld [vmem:[#allocation6 + $0x64] sm:$0xf] }
  0x32   :  { %309 = vmatpush.bf16.msra.mxu0 %v919_v29  ;;  %v1160_v62 = vld [vmem:[#allocation6 + $0x68] sm:$0xf0]  ;;  %v1159_v63 = vor.u32 %v1361_v59, %v1158_v58  ;;  %v1150_v1 = vld [vmem:[#allocation6 + $0x50] sm:$0xf]  ;;  %v1359_v2 = vld [vmem:[#allocation6 + $0x54] sm:$0xf0] }
  0x33   :  { %322 = vmatpush.bf16.msra.mxu1 %v983_v30  ;;  %v1163_v0 = vor.u32 %v1360_v61, %v1160_v62  ;;  %v1358_v3 = vld [vmem:[#allocation6 + $0x54] sm:$0xf]  ;;  %v1152_v4 = vld [vmem:[#allocation6 + $0x58] sm:$0xf0]  ;;  %v1151_v5 = vor.u32 %v1359_v2, %v1150_v1  ;;  %v1142_v7 = vld [vmem:[#allocation6 + $0x40] sm:$0xf] }
  0x34   :  { %335 = vmatpush.bf16.msra.mxu2 %v923_v31  ;;  %v1155_v6 = vor.u32 %v1358_v3, %v1152_v4  ;;  %v1357_v8 = vld [vmem:[#allocation6 + $0x44] sm:$0xf0]  ;;  %v1356_v9 = vld [vmem:[#allocation6 + $0x44] sm:$0xf]  ;;  %v1144_v10 = vld [vmem:[#allocation6 + $0x48] sm:$0xf0] }
  0x35   :  { %348 = vmatpush.bf16.msra.mxu3 %v987_v33  ;;  %310 = vmatmul.bf16.vlgmr.msra.gmra.mxu0 %v102_v36  ;;  %v136_v11 = vld [vmem:[%s1597_s2] sm:$0x3]  ;;  %v1143_v12 = vor.u32 %v1357_v8, %v1142_v7  ;;  %v1147_v13 = vor.u32 %v1356_v9, %v1144_v10  ;;  %v1134_v14 = vld [vmem:[#allocation6 + $0x30] sm:$0xf]  ;;  %v1354_v17 = vld [vmem:[#allocation6 + $0x34] sm:$0xf] }
  0x36   :  { %490 = vmatpush.bf16.msrb.mxu0 %v1339_v32  ;;  %323 = vmatmul.bf16.vlgmr.msra.gmra.mxu1 %v103_v38  ;;  %v1355_v15 = vld [vmem:[#allocation6 + $0x34] sm:$0xf0]  ;;  %v138_v16 = vperm.slane %v136_v11, 0  ;;  %v1136_v18 = vld [vmem:[#allocation6 + $0x38] sm:$0xf0]  ;;  %v139_v25 = vperm.slane %v136_v11, 1 }
  0x37   :  { %503 = vmatpush.bf16.msrb.mxu1 %v1347_v37  ;;  %336 = vmatmul.bf16.vlgmr.msra.gmra.mxu2 %v102_v36  ;;  %v1135_v19 = vor.u32 %v1355_v15, %v1134_v14  ;;  %v1139_v21 = vor.u32 %v1354_v17, %v1136_v18  ;;  %v1112_v54 = vld [vmem:[#allocation6 + $0x8] sm:$0xf0]  ;;  %v1379_v57 = vld [vmem:[#allocation7 + $0x74] sm:$0xf0]  ;;  %v1294_v58 = vld [vmem:[#allocation7 + $0xf0] sm:$0xf] }
  0x38   :  { %349 = vmatmul.bf16.vlgmr.msra.gmra.mxu3 %v103_v38  ;;  %620 = vmatpush.bf16.msrb.mxu2 %v1167_v56  ;;  %v1126_v38 = vld [vmem:[#allocation6 + $0x20] sm:$0xf]  ;;  %v1230_v56 = vld [vmem:[#allocation7 + $0x70] sm:$0xf]  ;;  %v1378_v61 = vld [vmem:[#allocation7 + $0x74] sm:$0xf] }
  0x39   :  { %633 = vmatpush.bf16.msrb.mxu3 %v1171_v60  ;;  %v1231_v59 = vor.u32 %v1379_v57, %v1230_v56  ;;  %v1395_v60 = vld [vmem:[#allocation7 + $0xf4] sm:$0xf0]  ;;  %v1232_v62 = vld [vmem:[#allocation7 + $0x78] sm:$0xf0]  ;;  %v1394_v1 = vld [vmem:[#allocation7 + $0xf4] sm:$0xf] }
  0x3a   :  { %491 = vmatpush.bf16.msrb.mxu0 %v1338_v39  ;;  %v1353_v39 = vld [vmem:[#allocation6 + $0x24] sm:$0xf0]  ;;  %v1296_v2 = vld [vmem:[#allocation7 + $0xf8] sm:$0xf0]  ;;  %v1222_v3 = vld [vmem:[#allocation7 + $0x60] sm:$0xf] }
  0x3b   :  { %504 = vmatpush.bf16.msrb.mxu1 %v1346_v40  ;;  %v1352_v40 = vld [vmem:[#allocation6 + $0x24] sm:$0xf]  ;;  %v1299_v4 = vor.u32 %v1394_v1, %v1296_v2  ;;  %v1393_v7 = vld [vmem:[#allocation7 + $0xe4] sm:$0xf0]  ;;  %v1224_v11 = vld [vmem:[#allocation7 + $0x68] sm:$0xf0] }
  0x3c   :  { %621 = vmatpush.bf16.msrb.mxu2 %v1159_v63  ;;  %v1295_v63 = vor.u32 %v1395_v60, %v1294_v58  ;;  %v1376_v10 = vld [vmem:[#allocation7 + $0x64] sm:$0xf]  ;;  %v1288_v14 = vld [vmem:[#allocation7 + $0xe8] sm:$0xf0]  ;;  %v1214_v15 = vld [vmem:[#allocation7 + $0x50] sm:$0xf] }
  0x3d   :  { %634 = vmatpush.bf16.msrb.mxu3 %v1163_v0  ;;  %v1235_v0 = vor.u32 %v1378_v61, %v1232_v62  ;;  %v1278_v18 = vld [vmem:[#allocation7 + $0xd0] sm:$0xf]  ;;  %v1385_v57 = vld [vmem:[#allocation7 + $0xa4] sm:$0xf0]  ;;  %v1368_v58 = vld [vmem:[#allocation7 + $0x24] sm:$0xf] }
  0x3e   :  { %492 = vmatpush.bf16.msrb.mxu0 %v1337_v41  ;;  %v1127_v41 = vor.u32 %v1353_v39, %v1126_v38  ;;  %v1198_v39 = vld [vmem:[#allocation7 + $0x30] sm:$0xf]  ;;  %v1384_v60 = vld [vmem:[#allocation7 + $0xa4] sm:$0xf]  ;;  %v1256_v61 = vld [vmem:[#allocation7 + $0xa8] sm:$0xf0] }
  0x3f   :  { %505 = vmatpush.bf16.msrb.mxu1 %v1345_v42  ;;  %v1128_v42 = vld [vmem:[#allocation6 + $0x28] sm:$0xf0]  ;;  %v1259_v2 = vor.u32 %v1384_v60, %v1256_v61 }
  0x40   :  { %622 = vmatpush.bf16.msrb.mxu2 %v1151_v5  ;;  %v1377_v5 = vld [vmem:[#allocation7 + $0x64] sm:$0xf0] }
  0x41   :  { %635 = vmatpush.bf16.msrb.mxu3 %v1155_v6  ;;  %v1286_v6 = vld [vmem:[#allocation7 + $0xe0] sm:$0xf]  ;;  %v1223_v8 = vor.u32 %v1377_v5, %v1222_v3 }
  0x42   :  { %493 = vmatpush.bf16.msrb.mxu0 %v1336_v43  ;;  %v1131_v43 = vor.u32 %v1352_v40, %v1128_v42  ;;  %v1287_v9 = vor.u32 %v1393_v7, %v1286_v6  ;;  %v1371_v40 = vld [vmem:[#allocation7 + $0x34] sm:$0xf0] }
  0x43   :  { %506 = vmatpush.bf16.msrb.mxu1 %v1344_v44  ;;  %v1118_v44 = vld [vmem:[#allocation6 + $0x10] sm:$0xf] }
  0x44   :  { %623 = vmatpush.bf16.msrb.mxu2 %v1143_v12  ;;  %v1392_v12 = vld [vmem:[#allocation7 + $0xe4] sm:$0xf] }
  0x45   :  { %636 = vmatpush.bf16.msrb.mxu3 %v1147_v13  ;;  %v1227_v13 = vor.u32 %v1376_v10, %v1224_v11  ;;  %v1291_v17 = vor.u32 %v1392_v12, %v1288_v14  ;;  %v1367_v10 = vld [vmem:[#allocation7 + $0x14] sm:$0xf0]  ;;  %v1246_v11 = vld [vmem:[#allocation7 + $0x90] sm:$0xf]  ;;  %v1366_v14 = vld [vmem:[#allocation7 + $0x14] sm:$0xf] }
  0x46   :  { %494 = vmatpush.bf16.msrb.mxu0 %v1335_v45  ;;  %v1351_v45 = vld [vmem:[#allocation6 + $0x14] sm:$0xf0] }
  0x47   :  { %507 = vmatpush.bf16.msrb.mxu1 %v1343_v47  ;;  %v1119_v47 = vor.u32 %v1351_v45, %v1118_v44  ;;  %v1370_v44 = vld [vmem:[#allocation7 + $0x34] sm:$0xf]  ;;  %v1200_v45 = vld [vmem:[#allocation7 + $0x38] sm:$0xf0] }
  0x48   :  { %624 = vmatpush.bf16.msrb.mxu2 %v1135_v19  ;;  %v1391_v19 = vld [vmem:[#allocation7 + $0xd4] sm:$0xf0] }
  0x49   :  { %637 = vmatpush.bf16.msrb.mxu3 %v1139_v21 }
  0x4a   :  { %495 = vmatpush.bf16.msrb.mxu0 %v1334_v46  ;;  %v1350_v46 = vld [vmem:[#allocation6 + $0x14] sm:$0xf] }
  0x4b   :  { %508 = vmatpush.bf16.msrb.mxu1 %v1342_v49 }
  0x4c   :  { %625 = vmatpush.bf16.msrb.mxu2 %v1127_v41  ;;  %v1262_v41 = vld [vmem:[#allocation7 + $0xb0] sm:$0xf] }
  0x4d   :  { %638 = vmatpush.bf16.msrb.mxu3 %v1131_v43  ;;  %v1387_v43 = vld [vmem:[#allocation7 + $0xb4] sm:$0xf0] }
  0x4e   :  { %496 = vmatpush.bf16.msrb.mxu0 %v1333_v48  ;;  %v1120_v48 = vld [vmem:[#allocation6 + $0x18] sm:$0xf0] }
  0x4f   :  { %509 = vmatpush.bf16.msrb.mxu1 %v1341_v51  ;;  %v1123_v49 = vor.u32 %v1350_v46, %v1120_v48  ;;  %v1349_v51 = vld [vmem:[#allocation6 + $0x4] sm:$0xf0]  ;;  %v1386_v46 = vld [vmem:[#allocation7 + $0xb4] sm:$0xf]  ;;  %v1404_v48 = vld [vmem:[%s1599_s4] ss:$0 sm:$0xff] }
  0x50   :  { %626 = vmatpush.bf16.msrb.mxu2 %v1119_v47  ;;  %v1264_v47 = vld [vmem:[#allocation7 + $0xb8] sm:$0xf0] }
  0x51   :  { %639 = vmatpush.bf16.msrb.mxu3 %v1123_v49  ;;  %v1199_v49 = vor.u32 %v1371_v40, %v1198_v39  ;;  %v1267_v56 = vor.u32 %v1386_v46, %v1264_v47  ;;  %v682_v46 = vld [vmem:[%s1603_s8] sm:$0x3] }
  0x52   :  { %497 = vmatpush.bf16.msrb.mxu0 %v1332_v50  ;;  %v1110_v50 = vld [vmem:[#allocation6] sm:$0xf] }
  0x53   :  { %510 = vmatpush.bf16.msrb.mxu1 %v1340_v52  ;;  %v1348_v52 = vld [vmem:[#allocation6 + $0x4] sm:$0xf]  ;;  %v1111_v53 = vor.u32 %v1349_v51, %v1110_v50  ;;  %v1263_v50 = vor.u32 %v1387_v43, %v1262_v41  ;;  %v1203_v51 = vor.u32 %v1370_v44, %v1200_v45 }
  0x54   :  { %v1115_v55 = vor.u32 %v1348_v52, %v1112_v54  ;;  %v1190_v52 = vld [vmem:[#allocation7 + $0x20] sm:$0xf] }
  0x55   :  { %627 = vmatpush.bf16.msrb.mxu2 %v1111_v53  ;;  %v1369_v53 = vld [vmem:[#allocation7 + $0x24] sm:$0xf0]  ;;  %v1254_v54 = vld [vmem:[#allocation7 + $0xa0] sm:$0xf] }
  0x56   :  { %640 = vmatpush.bf16.msrb.mxu3 %v1115_v55  ;;  %848 = vmatpush.bf16.msra.mxu0 %v1231_v59  ;;  %v1192_v59 = vld [vmem:[#allocation7 + $0x28] sm:$0xf0]  ;;  %v1191_v62 = vor.u32 %v1369_v53, %v1190_v52 }
  0x57   :  { %861 = vmatpush.bf16.msra.mxu1 %v1295_v63  ;;  %v1255_v63 = vor.u32 %v1385_v57, %v1254_v54 }
  0x59   :  { %874 = vmatpush.bf16.msra.mxu2 %v1235_v0  ;;  %v1195_v0 = vor.u32 %v1368_v58, %v1192_v59 }
  0x5a   :  { %887 = vmatpush.bf16.msra.mxu3 %v1299_v4  ;;  %849 = vmatpush.bf16.msra.mxu0 %v1223_v8 }
  0x5b   :  { %862 = vmatpush.bf16.msra.mxu1 %v1287_v9  ;;  %v1182_v9 = vld [vmem:[#allocation7 + $0x10] sm:$0xf] }
  0x5c   :  { %v1183_v12 = vor.u32 %v1367_v10, %v1182_v9 }
  0x5d   :  { %875 = vmatpush.bf16.msra.mxu2 %v1227_v13  ;;  %v1383_v13 = vld [vmem:[#allocation7 + $0x94] sm:$0xf0] }
  0x5e   :  { %888 = vmatpush.bf16.msra.mxu3 %v1291_v17 }
  0xb2   :  { %v311_v20 = vpop.f32.mrf.mxu0 }
  0xb3   :  { %v312_v22 = vadd.f32 %v311_v20, %v138_v16  ;;  %v324_v23 = vpop.f32.mrf.mxu1  ;;  %v1375_v16 = vld [vmem:[#allocation7 + $0x54] sm:$0xf0]  ;;  %v1374_v20 = vld [vmem:[#allocation7 + $0x54] sm:$0xf] }
  0xb4   :  { %v1215_v21 = vor.u32 %v1375_v16, %v1214_v15  ;;  %v1184_v15 = vld [vmem:[#allocation7 + $0x18] sm:$0xf0]  ;;  %v1247_v16 = vor.u32 %v1383_v13, %v1246_v11 }
  0xb5   :  { %v325_v24 = vadd.f32 %v324_v23, %v312_v22  ;;  %v1216_v22 = vld [vmem:[#allocation7 + $0x58] sm:$0xf0]  ;;  %v1390_v23 = vld [vmem:[#allocation7 + $0xd4] sm:$0xf]  ;;  %v1187_v17 = vor.u32 %v1366_v14, %v1184_v15 }
  0xb6   :  { %850 = vmatpush.bf16.msra.mxu0 %v1215_v21  ;;  %v1174_v21 = vld [vmem:[#allocation7] sm:$0xf] }
  0xb7   :  { %v354_v26 = vmax.f32 %v325_v24, 0.0  ;;  %v1280_v24 = vld [vmem:[#allocation7 + $0xd8] sm:$0xf0] }
  0xb9   :  { %v356_v27 = vpack.c.bf16 %v354_v26, %v354_v26  ;;  %v1219_v26 = vor.u32 %v1374_v20, %v1216_v22  ;;  %v1365_v22 = vld [vmem:[#allocation7 + $0x4] sm:$0xf0] }
  0xba   :  { %v337_v28 = vpop.f32.mrf.mxu2  ;;  %v313_v31 = vpop.f32.mrf.mxu0 }
  0xbb   :  { %v338_v29 = vadd.f32 %v337_v28, %v139_v25  ;;  %v350_v30 = vpop.f32.mrf.mxu3  ;;  %v326_v32 = vpop.f32.mrf.mxu1  ;;  %498 = vmatmul.bf16.vlgmr.msrb.gmra.mxu0 %v356_v27  ;;  %v1279_v25 = vor.u32 %v1391_v19, %v1278_v18  ;;  %v1206_v27 = vld [vmem:[#allocation7 + $0x40] sm:$0xf]  ;;  %v1373_v28 = vld [vmem:[#allocation7 + $0x44] sm:$0xf0]  ;;  %876 = vmatpush.bf16.msra.mxu2 %v1219_v26  ;;  %v1382_v18 = vld [vmem:[#allocation7 + $0x94] sm:$0xf] }
  0xbc   :  { %v1389_v31 = vld [vmem:[#allocation7 + $0xc4] sm:$0xf0]  ;;  %v1372_v32 = vld [vmem:[#allocation7 + $0x44] sm:$0xf]  ;;  %v1248_v19 = vld [vmem:[#allocation7 + $0x98] sm:$0xf0] }
  0xbd   :  { %v351_v33 = vadd.f32 %v350_v30, %v338_v29  ;;  %v1270_v29 = vld [vmem:[#allocation7 + $0xc0] sm:$0xf]  ;;  %v1283_v30 = vor.u32 %v1390_v23, %v1280_v24  ;;  %863 = vmatpush.bf16.msra.mxu1 %v1279_v25  ;;  %v1251_v20 = vor.u32 %v1382_v18, %v1248_v19  ;;  %v1175_v24 = vor.u32 %v1365_v22, %v1174_v21  ;;  %v1381_v25 = vld [vmem:[#allocation7 + $0x84] sm:$0xf0]  ;;  %v1364_v26 = vld [vmem:[#allocation7 + $0x4] sm:$0xf] }
  0xbe   :  { %v1238_v23 = vld [vmem:[#allocation7 + $0x80] sm:$0xf] }
  0xbf   :  { %v355_v34 = vmax.f32 %v351_v33, 0.0  ;;  %v1208_v33 = vld [vmem:[#allocation7 + $0x48] sm:$0xf0]  ;;  %889 = vmatpush.bf16.msra.mxu3 %v1283_v30  ;;  %v1380_v30 = vld [vmem:[#allocation7 + $0x84] sm:$0xf] }
  0xc0   :  { %v1211_v38 = vor.u32 %v1372_v32, %v1208_v33  ;;  %v534_v33 = vld [vmem:[%s1601_s6] sm:$0x3] }
  0xc1   :  { %v357_v35 = vpack.c.bf16 %v355_v34, %v355_v34  ;;  %v1388_v34 = vld [vmem:[#allocation7 + $0xc4] sm:$0xf] }
  0xc2   :  { %v339_v36 = vpop.f32.mrf.mxu2  ;;  %877 = vmatpush.bf16.msra.mxu2 %v1211_v38 }
  0xc3   :  { %v352_v37 = vpop.f32.mrf.mxu3  ;;  %511 = vmatmul.bf16.vlgmr.msrb.gmra.mxu1 %v357_v35  ;;  %v1272_v35 = vld [vmem:[#allocation7 + $0xc8] sm:$0xf0]  ;;  %v1207_v36 = vor.u32 %v1373_v28, %v1206_v27  ;;  %v1239_v28 = vor.u32 %v1381_v25, %v1238_v23 }
  0xc4   :  { %v1271_v37 = vor.u32 %v1389_v31, %v1270_v29  ;;  %v1275_v42 = vor.u32 %v1388_v34, %v1272_v35  ;;  %v1176_v27 = vld [vmem:[#allocation7 + $0x8] sm:$0xf0]  ;;  %v536_v34 = vperm.slane %v534_v33, 0  ;;  %v537_v35 = vperm.slane %v534_v33, 1 }
  0xc5   :  { %851 = vmatpush.bf16.msra.mxu0 %v1207_v36  ;;  %v1179_v29 = vor.u32 %v1364_v26, %v1176_v27  ;;  %v1240_v31 = vld [vmem:[#allocation7 + $0x88] sm:$0xf0] }
  0xc6   :  { %864 = vmatpush.bf16.msra.mxu1 %v1271_v37  ;;  %890 = vmatpush.bf16.msra.mxu3 %v1275_v42  ;;  %v1243_v32 = vor.u32 %v1380_v30, %v1240_v31 }
  0xc7   :  { %878 = vmatpush.bf16.msra.mxu2 %v1203_v51 }
  0xc9   :  { %852 = vmatpush.bf16.msra.mxu0 %v1199_v49  ;;  %v684_v49 = vperm.slane %v682_v46, 0 }
  0xca   :  { %865 = vmatpush.bf16.msra.mxu1 %v1263_v50  ;;  %891 = vmatpush.bf16.msra.mxu3 %v1267_v56  ;;  %v685_v50 = vperm.slane %v682_v46, 1 }
  0xcb   :  { %879 = vmatpush.bf16.msra.mxu2 %v1195_v0 }
  0xcd   :  { %853 = vmatpush.bf16.msra.mxu0 %v1191_v62 }
  0xce   :  { %866 = vmatpush.bf16.msra.mxu1 %v1255_v63  ;;  %892 = vmatpush.bf16.msra.mxu3 %v1259_v2 }
  0xcf   :  { %880 = vmatpush.bf16.msra.mxu2 %v1187_v17 }
  0xd1   :  { %854 = vmatpush.bf16.msra.mxu0 %v1183_v12 }
  0xd2   :  { %867 = vmatpush.bf16.msra.mxu1 %v1247_v16  ;;  %893 = vmatpush.bf16.msra.mxu3 %v1251_v20 }
  0xd3   :  { %881 = vmatpush.bf16.msra.mxu2 %v1179_v29 }
  0xd5   :  { %855 = vmatpush.bf16.msra.mxu0 %v1175_v24 }
  0xd6   :  { %868 = vmatpush.bf16.msra.mxu1 %v1239_v28  ;;  %894 = vmatpush.bf16.msra.mxu3 %v1243_v32 }
 0x138   :  { %v499_v55 = vpop.f32.mrf.mxu0 }
 0x139   :  { %v500_v1 = vadd.f32 %v1404_v48, %v499_v55 }
 0x140   :  { %v512_v3 = vpop.f32.mrf.mxu1  ;;  %v501_v5 = vpop.f32.mrf.mxu0 }
 0x141   :  { %v513_v4 = vadd.f32 %v512_v3, %v500_v1 }
 0x143   :  { %v516_v6 = vmax.f32 %v513_v4, 0.0 }
 0x145   :  { %v517_v7 = vpack.c.bf16 %v516_v6, %v516_v6 }
 0x147   :  { %628 = vmatmul.bf16.vlgmr.msrb.gmra.mxu2 %v517_v7  ;;  %641 = vmatmul.bf16.vlgmr.msrb.gmra.mxu3 %v517_v7 }
 0x148   :  { %v514_v8 = vpop.f32.mrf.mxu1 }
 0x1ca   :  { %v629_v36 = vpop.f32.mrf.mxu2  ;;  %v642_v37 = vpop.f32.mrf.mxu3 }
 0x1cb   :  { %v630_v38 = vadd.f32 %v629_v36, %v536_v34  ;;  %v643_v39 = vadd.f32 %v642_v37, %v537_v35 }
 0x1cd   :  { %v646_v40 = vmax.f32 %v630_v38, 0.0  ;;  %v647_v41 = vmax.f32 %v643_v39, 0.0 }
 0x1cf   :  { %v648_v42 = vpack.c.bf16 %v646_v40, %v646_v40  ;;  %v649_v43 = vpack.c.bf16 %v647_v41, %v647_v41 }
 0x1d1   :  { %856 = vmatmul.bf16.vlgmr.msra.gmra.mxu0 %v648_v42  ;;  %869 = vmatmul.bf16.vlgmr.msra.gmra.mxu1 %v649_v43 }
 0x1d2   :  { %882 = vmatmul.bf16.vlgmr.msra.gmra.mxu2 %v648_v42  ;;  %895 = vmatmul.bf16.vlgmr.msra.gmra.mxu3 %v649_v43  ;;  %v631_v44 = vpop.f32.mrf.mxu2  ;;  %v644_v45 = vpop.f32.mrf.mxu3 }
 0x24e   :  { %v857_v47 = vpop.f32.mrf.mxu0  ;;  %v870_v48 = vpop.f32.mrf.mxu1 }
 0x24f   :  { %v858_v51 = vadd.f32 %v857_v47, %v684_v49 }
 0x251   :  { %v871_v57 = vadd.f32 %v870_v48, %v858_v51 }
 0x253   :  { %v900_v60 = vmax.f32 %v871_v57, 0.0 }
 0x255   :  { %v883_v52 = vpop.f32.mrf.mxu2  ;;  %v896_v53 = vpop.f32.mrf.mxu3 }
 0x256   :  { %v884_v54 = vadd.f32 %v883_v52, %v685_v50  ;;  %v859_v55 = vpop.f32.mrf.mxu0  ;;  %v872_v56 = vpop.f32.mrf.mxu1 }
 0x258   :  { %v897_v58 = vadd.f32 %v896_v53, %v884_v54 }
 0x25a   :  { %v901_v59 = vmax.f32 %v897_v58, 0.0 }
 0x25c   :  { %v904_v61 = vrot.slane %v901_v59, 6 }
 0x25d   :  { %v885_v62 = vpop.f32.mrf.mxu2  ;;  %v898_v63 = vpop.f32.mrf.mxu3 }
 0x25e   :  { %v906_v0 = vsel %vm905_vm0, %v900_v60, %v904_v61 }
 0x25f   :  { %908 = vst [vmem:[%s1604_s9] sm:$0xf] %v906_v0 }
 0x260   :  { %913 = vsyncpa [#allocation3], 1 }
 0x261   :  { %914 = vsyncpa [#allocation5], 1 }
 0x262   :  { %915 = vsyncpa [#allocation8], 1 }

</bundles_post_ra>
